<compile_context>
chip_gen: v7x
topology: tpu7x:2x2x1
jax: 0.10.0
libtpu: 0.0.40
codegen_flags: <defaults>
</compile_context>

<pallas_src>
import numpy as np
import jax
import jax.numpy as jnp
from jax.experimental import pallas as pl
from jax.experimental.pallas import tpu as pltpu


# ----------------------------------------------------------------------------
# Host-side geometry (mirrors DiscreteOrientationSet; no scipy/sklearn needed)
# ----------------------------------------------------------------------------
def quat_mul_np(q1, q2):
    """Hamilton product, quaternions stored [x, y, z, w] (same as module)."""
    q1 = np.atleast_2d(np.asarray(q1, dtype=np.float64))
    q2 = np.atleast_2d(np.asarray(q2, dtype=np.float64))
    x1, y1, z1, w1 = q1[:, 0], q1[:, 1], q1[:, 2], q1[:, 3]
    x2, y2, z2, w2 = q2[:, 0], q2[:, 1], q2[:, 2], q2[:, 3]
    w = w1 * w2 - x1 * x2 - y1 * y2 - z1 * z2
    x = w1 * x2 + x1 * w2 + y1 * z2 - z1 * y2
    y = w1 * y2 - x1 * z2 + y1 * w2 + z1 * x2
    z = w1 * z2 + x1 * y2 - y1 * x2 + z1 * w2
    return np.stack([x, y, z, w], axis=-1)


def _axis_quat(axis, angle):
    h = angle / 2.0
    v = np.zeros(3, dtype=np.float64)
    v[axis] = np.sin(h)
    return np.array([v[0], v[1], v[2], np.cos(h)], dtype=np.float64)


def latitude_band_grid(center_lat_deg, band_width_deg, n_lon, n_lat):
    """DiscreteOrientationSet.from_latitude_band_grid (R = Rz(theta) @ Ry(phi))."""
    center = np.deg2rad(center_lat_deg)
    width = np.deg2rad(band_width_deg)
    if n_lat == 1:
        lats = [center]
    else:
        step = width / (n_lat - 1)
        lats = [center - width / 2 + i * step for i in range(n_lat)]
    lats = [np.clip(l, -np.pi / 2 + 1e-6, np.pi / 2 - 1e-6) for l in lats]
    polars = [np.pi / 2 - l for l in lats]
    lons = [i * 2 * np.pi / n_lon for i in range(n_lon)]
    quats = []
    for phi in polars:
        for theta in lons:
            q = quat_mul_np(_axis_quat(2, theta), _axis_quat(1, phi))[0]
            quats.append(q)
    arr = np.array(quats, dtype=np.float64)
    return arr / np.linalg.norm(arr, axis=1, keepdims=True)


def local_grid_kernel(rows, cols, spacing_deg):
    """DiscreteOrientationSet.from_local_grid_kernel (extrinsic 'yx' euler)."""
    sp = np.deg2rad(spacing_deg)
    cr, cc = (rows - 1) / 2.0, (cols - 1) / 2.0
    quats = []
    for r in range(rows):
        for c in range(cols):
            y_off = (r - cr) * sp
            x_off = (c - cc) * sp
            # extrinsic y then x  =>  R = Rx(y_off) @ Ry(x_off)
            q = quat_mul_np(_axis_quat(0, y_off), _axis_quat(1, x_off))[0]
            quats.append(q)
    arr = np.array(quats, dtype=np.float64)
    return arr / np.linalg.norm(arr, axis=1, keepdims=True)


def best_match(input_orients, query_quat, angle_thresh):
    """query_within_angle + argmin(distance), brute-force branch of the module."""
    d = np.abs(np.sum(input_orients * query_quat[None, :], axis=1))
    d = np.clip(d, -1.0, 1.0)
    ang = 2.0 * np.arccos(d)
    idxs = np.where(ang < angle_thresh)[0]
    if len(idxs) == 0:
        return -1
    return int(idxs[np.argmin(ang[idxs])])


def build_gather_table(out_orients, kernel_rel, in_orients, thresh):
    N, K = out_orients.shape[0], kernel_rel.shape[0]
    tbl = np.full((N, K), -1, dtype=np.int64)
    for i in range(N):
        targets = quat_mul_np(out_orients[i], kernel_rel)
        for k in range(K):
            tbl[i, k] = best_match(in_orients, targets[k], thresh)
    return tbl


def round_up(a, m):
    return ((a + m - 1) // m) * m


# ----------------------------------------------------------------------------
# Pallas kernel: fused (conv ∘ pool-gather) matmul -> bias+ReLU+mask -> max -> FC
# ----------------------------------------------------------------------------
def make_kernel(Kp, P2):
    def kernel(x_ref, wcp_ref, b_ref, neg_ref, fcw_ref, fcb_ref, o_ref):
        # Single bf16 MXU matmul produces, for every pool kernel point k and
        # every pool output column, the gathered pre-ReLU conv activation.
        xb = x_ref[...].astype(jnp.bfloat16)
        g = jnp.dot(xb, wcp_ref[...], preferred_element_type=jnp.float32)
        # bias, ReLU, then large-negative mask for unmatched pool positions.
        g = jnp.maximum(g + b_ref[...], 0.0) + neg_ref[...]
        # Max-pool over the Kp kernel points: lane-aligned 128-wide slices.
        pooled = g[:, 0:P2]
        for k in range(1, Kp):
            pooled = jnp.maximum(pooled, g[:, k * P2:(k + 1) * P2])
        # Final fully-connected layer (padded to 128 output lanes).
        out = jnp.dot(pooled.astype(jnp.bfloat16), fcw_ref[...],
                      preferred_element_type=jnp.float32) + fcb_ref[...]
        o_ref[...] = out
    return kernel


def spherical_cnn_forward(x_flat_pad, wcp, bias_cat, neg_cat, fcw, fcb,
                          *, tb, kp, p2, nc_pad):
    B_pad, K_in_pad = x_flat_pad.shape
    grid = (B_pad // tb,)
    kernel = make_kernel(kp, p2)

    flops = 2 * B_pad * (K_in_pad * kp * p2 + p2 * nc_pad)
    bytes_accessed = (x_flat_pad.size * 4 + wcp.size * 2 + bias_cat.size * 4
                      + neg_cat.size * 4 + fcw.size * 2 + fcb.size * 4
                      + B_pad * nc_pad * 4)

    return pl.pallas_call(
        kernel,
        out_shape=jax.ShapeDtypeStruct((B_pad, nc_pad), jnp.float32),
        grid=grid,
        in_specs=[
            pl.BlockSpec((tb, K_in_pad), lambda i: (i, 0)),      # activations: tiled on batch
            pl.BlockSpec(wcp.shape, lambda i: (0, 0)),           # fused conv+pool weights (resident)
            pl.BlockSpec(bias_cat.shape, lambda i: (0, 0)),
            pl.BlockSpec(neg_cat.shape, lambda i: (0, 0)),
            pl.BlockSpec(fcw.shape, lambda i: (0, 0)),
            pl.BlockSpec(fcb.shape, lambda i: (0, 0)),
        ],
        out_specs=pl.BlockSpec((tb, nc_pad), lambda i: (i, 0)),
        compiler_params=pltpu.CompilerParams(
            dimension_semantics=("parallel",),
            vmem_limit_bytes=32 * 1024 * 1024),
        cost_estimate=pl.CostEstimate(flops=flops, transcendentals=0,
                                      bytes_accessed=bytes_accessed),
    )(x_flat_pad, wcp, bias_cat, neg_cat, fcw, fcb)


# ----------------------------------------------------------------------------
# Plain-numpy reference that mirrors the PyTorch loops exactly
# ----------------------------------------------------------------------------
def reference_forward_np(x, W, Bc, conv_idx, pool_idx, fcW, fcB):
    B, N0, C_in = x.shape
    C_out, _, K1 = W.shape
    N1 = conv_idx.shape[0]
    N2, Kp = pool_idx.shape

    xt = np.transpose(x, (0, 2, 1))                       # (B, C_in, N0)
    h = np.zeros((B, C_out, N1), dtype=np.float32)
    for i in range(N1):
        gathered = np.zeros((B, C_in, K1), dtype=np.float32)
        for k in range(K1):
            idx = conv_idx[i, k]
            if idx >= 0:
                gathered[:, :, k] = xt[:, :, idx]
        conv_out = np.sum(gathered[:, None, :, :] * W[None], axis=(-1, -2))
        h[:, :, i] = conv_out + Bc[:, i][None, :]
    h = np.maximum(np.transpose(h, (0, 2, 1)), 0.0)       # (B, N1, C_out), ReLU

    ht = np.transpose(h, (0, 2, 1))                       # (B, C_out, N1)
    p = np.zeros((B, C_out, N2), dtype=np.float32)
    for j in range(N2):
        gathered = np.full((B, C_out, Kp), -np.inf, dtype=np.float32)
        for k in range(Kp):
            idx = pool_idx[j, k]
            if idx >= 0:
                gathered[:, :, k] = ht[:, :, idx]
        p[:, :, j] = np.max(gathered, axis=-1)
    p = np.transpose(p, (0, 2, 1))                        # (B, N2, C_out)
    feat = p.reshape(B, -1)
    return feat @ fcW + fcB


# ----------------------------------------------------------------------------
# Main
# ----------------------------------------------------------------------------
if __name__ == "__main__":
    # Config (same structure / defaults as SphericalCNN.__init__, small sizes)
    config = dict(
        in_channels=4, conv1_out_channels=8, num_classes=2,
        angular_threshold_deg=25.0,
        layer0_center_lat=0, layer0_width_deg=60, layer0_lon=16, layer0_lat=4,
        kernel1_rows=3, kernel1_cols=3, kernel1_spacing_deg=10,
        layer1_center_lat=0, layer1_width_deg=50, layer1_lon=12, layer1_lat=3,
        layer2_center_lat=0, layer2_width_deg=40, layer2_lon=6, layer2_lat=2,
        pool_kernel1_rows=2, pool_kernel1_cols=2, pool_kernel1_spacing_deg=12,
        pool1_type='max',
    )
    thresh = np.deg2rad(config['angular_threshold_deg'])

    # Discrete orientation sets
    layer0 = latitude_band_grid(config['layer0_center_lat'], config['layer0_width_deg'],
                                config['layer0_lon'], config['layer0_lat'])
    kernel1 = local_grid_kernel(config['kernel1_rows'], config['kernel1_cols'],
                                config['kernel1_spacing_deg'])
    layer1 = latitude_band_grid(config['layer1_center_lat'], config['layer1_width_deg'],
                                config['layer1_lon'], config['layer1_lat'])
    layer2 = latitude_band_grid(config['layer2_center_lat'], config['layer2_width_deg'],
                                config['layer2_lon'], config['layer2_lat'])
    pool_kernel1 = local_grid_kernel(config['pool_kernel1_rows'], config['pool_kernel1_cols'],
                                     config['pool_kernel1_spacing_deg'])

    N0, K1, N1 = len(layer0), len(kernel1), len(layer1)
    N2, Kp = len(layer2), len(pool_kernel1)
    C_in, C_out = config['in_channels'], config['conv1_out_channels']
    n_classes = config['num_classes']
    B = 2

    # Input-independent gather tables (nearest-orientation matching)
    conv_idx = build_gather_table(layer1, kernel1, layer0, thresh)        # (N1, K1)
    pool_idx = build_gather_table(layer2, pool_kernel1, layer1, thresh)   # (N2, Kp)

    # Deterministic parameter init (shapes from SphericalConvLayer / nn.Linear)
    key = jax.random.PRNGKey(0)
    kx, kW, kB, kFW, kFB = jax.random.split(key, 5)
    x = jax.random.normal(kx, (B, N0, C_in), dtype=jnp.float32)
    W = jax.random.normal(kW, (C_out, C_in, K1), dtype=jnp.float32)       # conv weight
    Bc = jax.random.normal(kB, (C_out, N1), dtype=jnp.float32)            # conv bias
    fcW = 0.1 * jax.random.normal(kFW, (N2 * C_out, n_classes), dtype=jnp.float32)
    fcB = 0.1 * jax.random.normal(kFB, (1, n_classes), dtype=jnp.float32)

    Wn, Bcn = np.asarray(W), np.asarray(Bc)
    fcWn, fcBn = np.asarray(fcW), np.asarray(fcB)

    # ---------------- Host-side folding into lane-aligned matrices ------------
    K_in = N0 * C_in                       # conv contraction dim (flattened input)
    K_in_pad = round_up(K_in, 128)
    P2 = round_up(N2 * C_out, 128)         # pooled feature width, padded to 128 lanes
    NC_pad = round_up(n_classes, 128)      # FC output width, padded to 128 lanes
    NEG = np.float32(-1e30)                # finite sentinel instead of -inf

    # Dense "effective conv" matrix (weights scattered per the match table).
    conv_mat = np.zeros((K_in, N1 * C_out), dtype=np.float32)
    for i in range(N1):
        for k in range(K1):
            n = conv_idx[i, k]
            if n >= 0:
                conv_mat[n * C_in:(n + 1) * C_in, i * C_out:(i + 1) * C_out] += Wn[:, :, k].T
    conv_bias_flat = Bcn.T.reshape(N1 * C_out).astype(np.float32)          # [i*C_out + o]

    # Fold the one-hot pool gather into the conv matrix: for each pool kernel
    # point k, CP_k = conv_mat @ onehot_gather_k (a column selection), all Kp
    # concatenated along the lane axis with per-k padding to P2.
    wcp = np.zeros((K_in_pad, Kp * P2), dtype=np.float32)
    bias_cat = np.zeros((1, Kp * P2), dtype=np.float32)
    neg_cat = np.zeros((1, Kp * P2), dtype=np.float32)
    for k in range(Kp):
        base = k * P2
        for j in range(N2):
            n = pool_idx[j, k]
            col = base + j * C_out
            if n >= 0:
                wcp[:K_in, col:col + C_out] = conv_mat[:, n * C_out:(n + 1) * C_out]
                bias_cat[0, col:col + C_out] = conv_bias_flat[n * C_out:(n + 1) * C_out]
            else:
                neg_cat[0, col:col + C_out] = NEG
        # padded lanes [N2*C_out, P2) stay all-zero -> pooled value 0, killed by
        # the zero rows of the padded FC weight.

    # Padded FC weights / bias (zero rows for padded pooled lanes, zero cols for
    # padded class lanes).
    fcw_pad = np.zeros((P2, NC_pad), dtype=np.float32)
    fcw_pad[:N2 * C_out, :n_classes] = fcWn
    fcb_pad = np.zeros((1, NC_pad), dtype=np.float32)
    fcb_pad[0, :n_classes] = fcBn[0]

    # Batch tiling: sublane-multiple tiles, parallel grid axis.
    TB = min(128, round_up(B, 8))
    B_pad = round_up(B, TB)
    x_flat = np.zeros((B_pad, K_in_pad), dtype=np.float32)
    x_flat[:B, :K_in] = np.asarray(x).reshape(B, K_in)

    # bf16 weights (halves DMA, single-pass bf16 MXU matmul with f32 accumulate)
    wcp_bf16 = jnp.asarray(wcp, dtype=jnp.bfloat16)
    fcw_bf16 = jnp.asarray(fcw_pad, dtype=jnp.bfloat16)

    # ---------------------------- Run the Pallas kernel -----------------------
    out_pad = spherical_cnn_forward(
        jnp.asarray(x_flat),
        wcp_bf16, jnp.asarray(bias_cat), jnp.asarray(neg_cat),
        fcw_bf16, jnp.asarray(fcb_pad),
        tb=TB, kp=Kp, p2=P2, nc_pad=NC_pad,
    )
    out_pad = jax.block_until_ready(out_pad)
    out = np.asarray(out_pad)[:B, :n_classes]

    # Verify against the loop-level (PyTorch-equivalent) reference
    ref = reference_forward_np(np.asarray(x), Wn, Bcn, conv_idx, pool_idx, fcWn, fcBn)
    assert out.shape == (B, n_classes)
    finite = np.isfinite(ref)   # -inf/NaN only possible for fully-unmatched pool outputs
    assert np.allclose(out[finite], ref[finite], rtol=2e-2, atol=5e-2), (
        f"mismatch:\nkernel={out}\nref={ref}")
    print("KERNEL_OK")
</pallas_src>

<mosaic_0001>
module attributes {stable_mosaic.version = 11 : i64} {
  func.func @kernel(%arg0: i32, %arg1: memref<8x256xf32, #tpu.memory_space<vmem>>, %arg2: memref<256x512xbf16, #tpu.memory_space<vmem>>, %arg3: memref<1x512xf32, #tpu.memory_space<vmem>>, %arg4: memref<1x512xf32, #tpu.memory_space<vmem>>, %arg5: memref<128x128xbf16, #tpu.memory_space<vmem>>, %arg6: memref<1x128xf32, #tpu.memory_space<vmem>>, %arg7: memref<8x128xf32, #tpu.memory_space<vmem>>) attributes {dimension_semantics = [#tpu.dimension_semantics<parallel>], iteration_bounds = array<i64: 1>, scalar_prefetch = 0 : i64, scratch_operands = 0 : i64, tpu.core_type = #tpu.core_type<tc>, window_params = [{transform_indices = @transform_0, window_bounds = array<i64: 8, 256>}, {pipeline_mode = #tpu.pipeline_mode<synchronous>, transform_indices = @transform_1, window_bounds = array<i64: 256, 512>}, {pipeline_mode = #tpu.pipeline_mode<synchronous>, transform_indices = @transform_2, window_bounds = array<i64: 1, 512>}, {pipeline_mode = #tpu.pipeline_mode<synchronous>, transform_indices = @transform_3, window_bounds = array<i64: 1, 512>}, {pipeline_mode = #tpu.pipeline_mode<synchronous>, transform_indices = @transform_4, window_bounds = array<i64: 128, 128>}, {pipeline_mode = #tpu.pipeline_mode<synchronous>, transform_indices = @transform_5, window_bounds = array<i64: 1, 128>}, {transform_indices = @transform_6, window_bounds = array<i64: 8, 128>}]} {
    %c0 = arith.constant 0 : index
    %c0_0 = arith.constant 0 : index
    %0 = vector.load %arg1[%c0, %c0_0] : memref<8x256xf32, #tpu.memory_space<vmem>>, vector<8x256xf32>
    %1 = arith.truncf %0 : vector<8x256xf32> to vector<8x256xbf16>
    %c0_1 = arith.constant 0 : index
    %c0_2 = arith.constant 0 : index
    %2 = vector.load %arg2[%c0_1, %c0_2] : memref<256x512xbf16, #tpu.memory_space<vmem>>, vector<256x512xbf16>
    %cst = arith.constant dense<0.000000e+00> : vector<8x512xf32>
    %3 = tpu.matmul %1, %2, %cst {dimension_numbers = #tpu.dot_dimension_numbers<[1], [0], [0], [1], [0, 0, 1, 1], [], []>} : vector<8x256xbf16>, vector<256x512xbf16>, vector<8x512xf32> -> vector<8x512xf32>
    %c0_3 = arith.constant 0 : index
    %c0_4 = arith.constant 0 : index
    %4 = vector.load %arg3[%c0_3, %c0_4] : memref<1x512xf32, #tpu.memory_space<vmem>>, vector<1x512xf32>
    %5 = vector.broadcast %4 : vector<1x512xf32> to vector<8x512xf32>
    %6 = arith.addf %3, %5 : vector<8x512xf32>
    %cst_5 = arith.constant 0.000000e+00 : f32
    %7 = vector.broadcast %cst_5 : f32 to vector<8x512xf32>
    %8 = arith.maximumf %6, %7 : vector<8x512xf32>
    %c0_6 = arith.constant 0 : index
    %c0_7 = arith.constant 0 : index
    %9 = vector.load %arg4[%c0_6, %c0_7] : memref<1x512xf32, #tpu.memory_space<vmem>>, vector<1x512xf32>
    %10 = vector.broadcast %9 : vector<1x512xf32> to vector<8x512xf32>
    %11 = arith.addf %8, %10 : vector<8x512xf32>
    %12 = vector.extract_strided_slice %11 {offsets = [0, 0], sizes = [8, 128], strides = [1, 1]} : vector<8x512xf32> to vector<8x128xf32>
    %13 = vector.extract_strided_slice %11 {offsets = [0, 128], sizes = [8, 128], strides = [1, 1]} : vector<8x512xf32> to vector<8x128xf32>
    %14 = arith.maximumf %12, %13 : vector<8x128xf32>
    %15 = vector.extract_strided_slice %11 {offsets = [0, 256], sizes = [8, 128], strides = [1, 1]} : vector<8x512xf32> to vector<8x128xf32>
    %16 = arith.maximumf %14, %15 : vector<8x128xf32>
    %17 = vector.extract_strided_slice %11 {offsets = [0, 384], sizes = [8, 128], strides = [1, 1]} : vector<8x512xf32> to vector<8x128xf32>
    %18 = arith.maximumf %16, %17 : vector<8x128xf32>
    %19 = arith.truncf %18 : vector<8x128xf32> to vector<8x128xbf16>
    %c0_8 = arith.constant 0 : index
    %c0_9 = arith.constant 0 : index
    %20 = vector.load %arg5[%c0_8, %c0_9] : memref<128x128xbf16, #tpu.memory_space<vmem>>, vector<128x128xbf16>
    %cst_10 = arith.constant dense<0.000000e+00> : vector<8x128xf32>
    %21 = tpu.matmul %19, %20, %cst_10 {dimension_numbers = #tpu.dot_dimension_numbers<[1], [0], [0], [1], [0, 0, 1, 1], [], []>} : vector<8x128xbf16>, vector<128x128xbf16>, vector<8x128xf32> -> vector<8x128xf32>
    %c0_11 = arith.constant 0 : index
    %c0_12 = arith.constant 0 : index
    %22 = vector.load %arg6[%c0_11, %c0_12] : memref<1x128xf32, #tpu.memory_space<vmem>>, vector<1x128xf32>
    %23 = vector.broadcast %22 : vector<1x128xf32> to vector<8x128xf32>
    %24 = arith.addf %21, %23 : vector<8x128xf32>
    %c0_13 = arith.constant 0 : index
    %c0_14 = arith.constant 0 : index
    %25 = vector.load %arg7[%c0_13, %c0_14] : memref<8x128xf32, #tpu.memory_space<vmem>>, vector<8x128xf32>
    tpu.vector_store %arg7[%c0_13, %c0_14], %24 {strides = array<i32>} : memref<8x128xf32, #tpu.memory_space<vmem>>, vector<8x128xf32>,
    return
  }
  func.func @transform_0(%arg0: i32) -> (i32, i32) {
    %c0_i32 = arith.constant 0 : i32
    %c0_i32_0 = arith.constant 0 : i32
    return %arg0, %c0_i32 : i32, i32
  }
  func.func @transform_1(%arg0: i32) -> (i32, i32) {
    %c0_i32 = arith.constant 0 : i32
    %c0_i32_0 = arith.constant 0 : i32
    %c0_i32_1 = arith.constant 0 : i32
    return %c0_i32, %c0_i32_0 : i32, i32
  }
  func.func @transform_2(%arg0: i32) -> (i32, i32) {
    %c0_i32 = arith.constant 0 : i32
    %c0_i32_0 = arith.constant 0 : i32
    %c0_i32_1 = arith.constant 0 : i32
    return %c0_i32, %c0_i32_0 : i32, i32
  }
  func.func @transform_3(%arg0: i32) -> (i32, i32) {
    %c0_i32 = arith.constant 0 : i32
    %c0_i32_0 = arith.constant 0 : i32
    %c0_i32_1 = arith.constant 0 : i32
    return %c0_i32, %c0_i32_0 : i32, i32
  }
  func.func @transform_4(%arg0: i32) -> (i32, i32) {
    %c0_i32 = arith.constant 0 : i32
    %c0_i32_0 = arith.constant 0 : i32
    %c0_i32_1 = arith.constant 0 : i32
    return %c0_i32, %c0_i32_0 : i32, i32
  }
  func.func @transform_5(%arg0: i32) -> (i32, i32) {
    %c0_i32 = arith.constant 0 : i32
    %c0_i32_0 = arith.constant 0 : i32
    %c0_i32_1 = arith.constant 0 : i32
    return %c0_i32, %c0_i32_0 : i32, i32
  }
  func.func @transform_6(%arg0: i32) -> (i32, i32) {
    %c0_i32 = arith.constant 0 : i32
    %c0_i32_0 = arith.constant 0 : i32
    return %arg0, %c0_i32 : i32, i32
  }
}

</mosaic_0001>

<bundles_post_ra>
// kernel: tpu_custom_call.1
= control target key start
LH: loop header
LB: loop body
LE: loop exit
PB: predicated region body
PF: predicated region fallthrough
CT: control target
= control target key end

     0   :  { %11 = vsyncpa [#allocation3], 0  ;;  %s1130_s0 = inlined_call_operand.hbm [shape: f32[8,256], index: 0, kind: input, shape index: {}]   ;;  %s1131_s1 = inlined_call_operand.hbm [shape: bf16[256,512], index: 1, kind: input, shape index: {}]   ;;  %s1132_s2 = inlined_call_operand.vmem [shape: f32[1,512], index: 2, kind: input, shape index: {}]   ;;  %s1133_s3 = inlined_call_operand.vmem [shape: f32[1,512], index: 3, kind: input, shape index: {}]   ;;  %s1134_s4 = inlined_call_operand.hbm [shape: bf16[128,128], index: 4, kind: input, shape index: {}]   ;;  %s1135_s5 = inlined_call_operand.vmem [shape: f32[1,128], index: 5, kind: input, shape index: {}]   ;;  %s1136_s6 = inlined_call_operand.hbm [shape: f32[8,128], index: 6, kind: output, shape index: {}]  }
   0x1   :  { %12 = vsyncpa [#allocation6], 0 }
   0x2   :  { %13 = vsyncpa [#allocation4], 0  ;;  %s1028_s21 = smov [#allocation5]   ;;  %s934_s25 = scalar_lea.hbm %s1131_s1, 8192 }
   0x3   :  { %s29_s22 = sshll.u32 %s1028_s21, 4  ;;  %p935_p0 = scmp.ne.s32.totalorder %s1131_s1, %s934_s25  ;;  %s30_s22 = int_to_ptr.vmem [resolvable:$true] %s29_s22 }
   0x4   :  { %p938_p1 = scmp.lt.u32.totalorder %s934_s25, %s1131_s1 }
   0x6   :  { %p940_p2 = pnand %p938_p1, %p935_p0 }
   0x8   :  { %943 = shalt.err (!%p940_p2)
}
   0x9   :  { %s944_s30 = scalar_lea.vmem %s30_s22, 8192  ;;  %p949_p4 = scmp.lt.s32.totalorder %s30_s22, %s30_s22 }
   0xa   :  { %p945_p3 = scmp.ne.s32.totalorder %s30_s22, %s944_s30  ;;  %p950_p5 = scmp.lt.s32.totalorder %s944_s30, %s944_s30 }
   0xc   :  { %p951_p6 = por %p950_p5, %p949_p4 }
   0xe   :  { %p952_p7 = pnand %p951_p6, %p945_p3 }
  0x10   :  { %955 = shalt.err (!%p952_p7)
}
  0x11   :  { %s1029_s7 = smov 256   ;;  %s1030_s8 = smov 16  }
  0x12   :  { %35 = dma.hbm_to_vmem [thread:$0]  %s1131_s1, 8192, %s30_s22, [#allocation6], %s1029_s7, %s1029_s7, %s1030_s8  }
  0x13   :  { %s1031_s11 = smov [#allocation2]   ;;  %s1032_s13 = smov [#allocation7]  }
  0x14   :  { %s20_s12 = sshll.u32 %s1031_s11, 4  ;;  %s45_s14 = sshll.u32 %s1032_s13, 4  ;;  %s21_s12 = int_to_ptr.vmem [resolvable:$true] %s20_s12  ;;  %s46_s14 = int_to_ptr.vmem [resolvable:$true] %s45_s14 }
  0x15   :  { %s956_s17 = scalar_lea.hbm %s1130_s0, 256 }
  0x16   :  { %p957_p8 = scmp.ne.s32.totalorder %s1130_s0, %s956_s17  ;;  %p960_p9 = scmp.lt.u32.totalorder %s956_s17, %s1130_s0 }
  0x18   :  { %p962_p10 = pnand %p960_p9, %p957_p8 }
  0x1a   :  { %965 = shalt.err (!%p962_p10)
}
  0x1b   :  { %s966_s1 = scalar_lea.vmem %s21_s12, 256  ;;  %p971_p12 = scmp.lt.s32.totalorder %s21_s12, %s21_s12 }
  0x1c   :  { %p967_p11 = scmp.ne.s32.totalorder %s21_s12, %s966_s1  ;;  %p972_p13 = scmp.lt.s32.totalorder %s966_s1, %s966_s1 }
  0x1e   :  { %p973_p0 = por %p972_p13, %p971_p12 }
  0x20   :  { %p974_p1 = pnand %p973_p0, %p967_p11 }
  0x22   :  { %977 = shalt.err (!%p974_p1)
}
  0x23   :  { %23 = dma.hbm_to_vmem [thread:$0]  %s1130_s0, 256, %s21_s12, [#allocation3]  }
  0x24   :  { %s978_s26 = scalar_lea.hbm %s1134_s4, 1024 }
  0x25   :  { %p979_p2 = scmp.ne.s32.totalorder %s1134_s4, %s978_s26  ;;  %p982_p3 = scmp.lt.u32.totalorder %s978_s26, %s1134_s4 }
  0x27   :  { %p984_p4 = pnand %p982_p3, %p979_p2 }
  0x29   :  { %987 = shalt.err (!%p984_p4)
}
  0x2a   :  { %s988_s7 = scalar_lea.vmem %s46_s14, 1024  ;;  %p993_p6 = scmp.lt.s32.totalorder %s46_s14, %s46_s14 }
  0x2b   :  { %p989_p5 = scmp.ne.s32.totalorder %s46_s14, %s988_s7  ;;  %p994_p7 = scmp.lt.s32.totalorder %s988_s7, %s988_s7 }
  0x2d   :  { %p995_p8 = por %p994_p7, %p993_p6 }
  0x2f   :  { %p996_p9 = pnand %p995_p8, %p989_p5 }
  0x31   :  { %999 = shalt.err (!%p996_p9)
}
  0x32   :  { %s1033_s0 = smov 64   ;;  %s1034_s8 = smov 4  }
  0x33   :  { %51 = dma.hbm_to_vmem [thread:$0]  %s1134_s4, 1024, %s46_s14, [#allocation6], %s1033_s0, %s1033_s0, %s1034_s8  }
  0x34   :  { %1022 = dma.done.wait [#allocation3], 256  }
  0x35   :  { %1023 = vsyncadd [#allocation3], 4294967040 }
  0x36   :  { %1024 = dma.done.wait [#allocation6], 9216  }
  0x37   :  { %1025 = vsyncadd [#allocation6], 4294958080  ;;  %v830_v0 = vld [vmem:[#allocation5 + $0x4] ss:$16 sps:$4 sm:$0xff]   ;;  %v832_v1 = vld [vmem:[#allocation5 + $0xc] ss:$16 sps:$4 sm:$0xff]  }
  0x38   :  { %474 = vmatprep.subr.bf16.mxu0 %v830_v0  ;;  %v834_v2 = vld [vmem:[#allocation5] ss:$16 sps:$4 sm:$0xff]   ;;  %v835_v3 = vld [vmem:[#allocation5 + $0x8] ss:$16 sps:$4 sm:$0xff]   ;;  %515 = vmatprep.subr.bf16.mxu1 %v832_v1  ;;  %v836_v4 = vld [vmem:[#allocation5 + $0x24] ss:$16 sps:$4 sm:$0xff]  }
  0x39   :  { %475 = vmatpush1.bf16.msra.mxu0 %v834_v2  ;;  %516 = vmatpush1.bf16.msra.mxu1 %v835_v3  ;;  %v838_v5 = vld [vmem:[#allocation5 + $0x2c] ss:$16 sps:$4 sm:$0xff]   ;;  %v840_v6 = vld [vmem:[#allocation5 + $0x20] ss:$16 sps:$4 sm:$0xff]   ;;  %v841_v7 = vld [vmem:[#allocation5 + $0x28] ss:$16 sps:$4 sm:$0xff]  }
  0x3a   :  { %476 = vmatprep.subr.bf16.mxu0 %v836_v4  ;;  %517 = vmatprep.subr.bf16.mxu1 %v838_v5  ;;  %v842_v8 = vld [vmem:[#allocation5 + $0x44] ss:$16 sps:$4 sm:$0xff]   ;;  %v844_v9 = vld [vmem:[#allocation5 + $0x4c] ss:$16 sps:$4 sm:$0xff]   ;;  %v846_v10 = vld [vmem:[#allocation5 + $0x40] ss:$16 sps:$4 sm:$0xff]  }
  0x3b   :  { %v847_v11 = vld [vmem:[#allocation5 + $0x48] ss:$16 sps:$4 sm:$0xff]   ;;  %v848_v12 = vld [vmem:[#allocation5 + $0x64] ss:$16 sps:$4 sm:$0xff]   ;;  %v850_v13 = vld [vmem:[#allocation5 + $0x6c] ss:$16 sps:$4 sm:$0xff]  }
  0x3c   :  { %v852_v14 = vld [vmem:[#allocation5 + $0x60] ss:$16 sps:$4 sm:$0xff]   ;;  %v853_v15 = vld [vmem:[#allocation5 + $0x68] ss:$16 sps:$4 sm:$0xff]   ;;  %v854_v16 = vld [vmem:[#allocation5 + $0x84] ss:$16 sps:$4 sm:$0xff]  }
  0x3d   :  { %477 = vmatpush1.bf16.msra.mxu0 %v840_v6  ;;  %518 = vmatpush1.bf16.msra.mxu1 %v841_v7  ;;  %v856_v17 = vld [vmem:[#allocation5 + $0x8c] ss:$16 sps:$4 sm:$0xff]   ;;  %v858_v18 = vld [vmem:[#allocation5 + $0x80] ss:$16 sps:$4 sm:$0xff]   ;;  %v859_v19 = vld [vmem:[#allocation5 + $0x88] ss:$16 sps:$4 sm:$0xff]  }
  0x3e   :  { %478 = vmatprep.subr.bf16.mxu0 %v842_v8  ;;  %519 = vmatprep.subr.bf16.mxu1 %v844_v9  ;;  %v860_v20 = vld [vmem:[#allocation5 + $0xa4] ss:$16 sps:$4 sm:$0xff]   ;;  %v862_v21 = vld [vmem:[#allocation5 + $0xac] ss:$16 sps:$4 sm:$0xff]   ;;  %v864_v22 = vld [vmem:[#allocation5 + $0xa0] ss:$16 sps:$4 sm:$0xff]  }
  0x3f   :  { %v865_v23 = vld [vmem:[#allocation5 + $0xa8] ss:$16 sps:$4 sm:$0xff]   ;;  %v866_v24 = vld [vmem:[#allocation5 + $0xc4] ss:$16 sps:$4 sm:$0xff]   ;;  %v868_v25 = vld [vmem:[#allocation5 + $0xcc] ss:$16 sps:$4 sm:$0xff]  }
  0x40   :  { %v870_v26 = vld [vmem:[#allocation5 + $0xc0] ss:$16 sps:$4 sm:$0xff]   ;;  %v871_v27 = vld [vmem:[#allocation5 + $0xc8] ss:$16 sps:$4 sm:$0xff]   ;;  %v872_v28 = vld [vmem:[#allocation5 + $0xe4] ss:$16 sps:$4 sm:$0xff]  }
  0x41   :  { %479 = vmatpush1.bf16.msra.mxu0 %v846_v10  ;;  %520 = vmatpush1.bf16.msra.mxu1 %v847_v11  ;;  %v874_v29 = vld [vmem:[#allocation5 + $0xec] ss:$16 sps:$4 sm:$0xff]   ;;  %v876_v30 = vld [vmem:[#allocation5 + $0xe0] ss:$16 sps:$4 sm:$0xff]   ;;  %v877_v31 = vld [vmem:[#allocation5 + $0xe8] ss:$16 sps:$4 sm:$0xff]  }
  0x42   :  { %480 = vmatprep.subr.bf16.mxu0 %v848_v12  ;;  %521 = vmatprep.subr.bf16.mxu1 %v850_v13  ;;  %v878_v32 = vld [vmem:[#allocation5 + $0x104] ss:$16 sps:$4 sm:$0xff]   ;;  %v880_v33 = vld [vmem:[#allocation5 + $0x10c] ss:$16 sps:$4 sm:$0xff]   ;;  %v882_v34 = vld [vmem:[#allocation5 + $0x100] ss:$16 sps:$4 sm:$0xff]   ;;  %v134_v13 = vlaneseq }
  0x43   :  { %v883_v35 = vld [vmem:[#allocation5 + $0x108] ss:$16 sps:$4 sm:$0xff]   ;;  %v884_v36 = vld [vmem:[#allocation5 + $0x124] ss:$16 sps:$4 sm:$0xff]   ;;  %v886_v37 = vld [vmem:[#allocation5 + $0x12c] ss:$16 sps:$4 sm:$0xff]  }
  0x44   :  { %v888_v38 = vld [vmem:[#allocation5 + $0x120] ss:$16 sps:$4 sm:$0xff]   ;;  %v889_v39 = vld [vmem:[#allocation5 + $0x128] ss:$16 sps:$4 sm:$0xff]   ;;  %v890_v40 = vld [vmem:[#allocation5 + $0x144] ss:$16 sps:$4 sm:$0xff]  }
  0x45   :  { %481 = vmatpush1.bf16.msra.mxu0 %v852_v14  ;;  %522 = vmatpush1.bf16.msra.mxu1 %v853_v15  ;;  %v892_v41 = vld [vmem:[#allocation5 + $0x14c] ss:$16 sps:$4 sm:$0xff]   ;;  %v894_v42 = vld [vmem:[#allocation5 + $0x140] ss:$16 sps:$4 sm:$0xff]   ;;  %v895_v43 = vld [vmem:[#allocation5 + $0x148] ss:$16 sps:$4 sm:$0xff]  }
  0x46   :  { %482 = vmatprep.subr.bf16.mxu0 %v854_v16  ;;  %523 = vmatprep.subr.bf16.mxu1 %v856_v17  ;;  %v896_v44 = vld [vmem:[#allocation5 + $0x164] ss:$16 sps:$4 sm:$0xff]   ;;  %v898_v45 = vld [vmem:[#allocation5 + $0x16c] ss:$16 sps:$4 sm:$0xff]   ;;  %v900_v46 = vld [vmem:[#allocation5 + $0x160] ss:$16 sps:$4 sm:$0xff]  }
  0x47   :  { %v65_v47 = vld [vmem:[#allocation2 + $0x8] sm:$0xff]  ;;  %v902_v50 = vld [vmem:[#allocation5 + $0x184] ss:$16 sps:$4 sm:$0xff]   ;;  %v906_v52 = vld [vmem:[#allocation5 + $0x180] ss:$16 sps:$4 sm:$0xff]   ;;  %v1035_v5 = vmov 0.0  }
  0x48   :  { %v901_v48 = vld [vmem:[#allocation5 + $0x168] ss:$16 sps:$4 sm:$0xff]   ;;  %v67_v49 = vpack.c.bf16 %v65_v47, %v65_v47  ;;  %v904_v51 = vld [vmem:[#allocation5 + $0x18c] ss:$16 sps:$4 sm:$0xff]   ;;  %v908_v54 = vld [vmem:[#allocation5 + $0x1a4] ss:$16 sps:$4 sm:$0xff]  }
  0x49   :  { %483 = vmatpush1.bf16.msra.mxu0 %v858_v18  ;;  %524 = vmatpush1.bf16.msra.mxu1 %v859_v19  ;;  %v907_v53 = vld [vmem:[#allocation5 + $0x188] ss:$16 sps:$4 sm:$0xff]   ;;  %v910_v55 = vld [vmem:[#allocation5 + $0x1ac] ss:$16 sps:$4 sm:$0xff]   ;;  %v912_v56 = vld [vmem:[#allocation5 + $0x1a0] ss:$16 sps:$4 sm:$0xff]  }
  0x4a   :  { %484 = vmatprep.subr.bf16.mxu0 %v860_v20  ;;  %525 = vmatprep.subr.bf16.mxu1 %v862_v21  ;;  %v913_v57 = vld [vmem:[#allocation5 + $0x1a8] ss:$16 sps:$4 sm:$0xff]   ;;  %v914_v58 = vld [vmem:[#allocation5 + $0x1c4] ss:$16 sps:$4 sm:$0xff]   ;;  %v916_v59 = vld [vmem:[#allocation5 + $0x1cc] ss:$16 sps:$4 sm:$0xff]  }
  0x4b   :  { %506 = vmatprep.mubr.bf16.mxu0 %v67_v49  ;;  %547 = vmatprep.mubr.bf16.mxu1 %v67_v49  ;;  %v918_v60 = vld [vmem:[#allocation5 + $0x1c0] ss:$16 sps:$4 sm:$0xff]   ;;  %v919_v61 = vld [vmem:[#allocation5 + $0x1c8] ss:$16 sps:$4 sm:$0xff]   ;;  %v920_v62 = vld [vmem:[#allocation5 + $0x1e4] ss:$16 sps:$4 sm:$0xff]  }
  0x4c   :  { %v922_v63 = vld [vmem:[#allocation5 + $0x1ec] ss:$16 sps:$4 sm:$0xff]   ;;  %v924_v0 = vld [vmem:[#allocation5 + $0x1e0] ss:$16 sps:$4 sm:$0xff]   ;;  %v925_v1 = vld [vmem:[#allocation5 + $0x1e8] ss:$16 sps:$4 sm:$0xff]  }
  0x4d   :  { %485 = vmatpush1.bf16.msra.mxu0 %v864_v22  ;;  %526 = vmatpush1.bf16.msra.mxu1 %v865_v23  ;;  %v64_v2 = vld [vmem:[#allocation2] sm:$0xff]  ;;  %v926_v4 = vld [vmem:[#allocation7] sm:$0xff]   ;;  %v927_v6 = vld [vmem:[#allocation7 + $0x8] sm:$0xff]   ;;  %vm1036_vm0 = vmmov 0   ;;  %v135_v14 = vshrl.u32 %v134_v13, 7  ;;  %s1037_s14 = smov [#allocation8]  }
  0x4e   :  { %486 = vmatprep.subr.bf16.mxu0 %v866_v24  ;;  %527 = vmatprep.subr.bf16.mxu1 %v868_v25  ;;  %v66_v3 = vpack.c.bf16 %v64_v2, %v64_v2  ;;  %v928_v7 = vld [vmem:[#allocation7 + $0x10] sm:$0xff]   ;;  %v929_v8 = vld [vmem:[#allocation7 + $0x18] sm:$0xff]   ;;  %v930_v9 = vld [vmem:[#allocation7 + $0x20] sm:$0xff]   ;;  %s708_s15 = sshll.u32 %s1037_s14, 4  ;;  %s709_s15 = int_to_ptr.vmem [resolvable:$true] %s708_s15 }
  0x4f   :  { %v931_v10 = vld [vmem:[#allocation7 + $0x28] sm:$0xff]   ;;  %v932_v11 = vld [vmem:[#allocation7 + $0x30] sm:$0xff]   ;;  %v933_v12 = vld [vmem:[#allocation7 + $0x38] sm:$0xff]   ;;  %v136_v15 = vsub.s32 0, %v135_v14  ;;  %v144_v16 = vsub.s32 2, %v135_v14  ;;  %v140_v18 = vsub.s32 1, %v135_v14  ;;  %p1005_p11 = scmp.lt.s32.totalorder %s709_s15, %s709_s15 }
  0x50   :  { %v132_v17 = vld [vmem:[%s1132_s2] sm:$0xf]  ;;  %v148_v19 = vsub.s32 3, %v135_v14  ;;  %s1000_s16 = scalar_lea.vmem %s709_s15, 128 }
  0x51   :  { %487 = vmatpush1.bf16.msra.mxu0 %v870_v26  ;;  %528 = vmatpush1.bf16.msra.mxu1 %v871_v27  ;;  %v137_v20 = vrot.slane %v132_v17, %v136_v15  ;;  %v145_v21 = vrot.slane %v132_v17, %v144_v16  ;;  %v560_v22 = vld [vmem:[%s1133_s3] sm:$0xf]  ;;  %v141_v23 = vrot.slane %v132_v17, %v140_v18  ;;  %p1001_p10 = scmp.ne.s32.totalorder %s709_s15, %s1000_s16  ;;  %p1006_p12 = scmp.lt.s32.totalorder %s1000_s16, %s1000_s16 }
  0x52   :  { %488 = vmatprep.subr.bf16.mxu0 %v872_v28  ;;  %529 = vmatprep.subr.bf16.mxu1 %v874_v29  ;;  %v149_v24 = vrot.slane %v132_v17, %v148_v19  ;;  %v565_v28 = vrot.slane %v560_v22, %v136_v15  ;;  %v577_v47 = vrot.slane %v560_v22, %v148_v19 }
  0x53   :  { %p1007_p13 = por %p1006_p12, %p1005_p11 }
  0x55   :  { %489 = vmatpush1.bf16.msra.mxu0 %v876_v30  ;;  %530 = vmatpush1.bf16.msra.mxu1 %v877_v31  ;;  %p1008_p0 = pnand %p1007_p13, %p1001_p10 }
  0x56   :  { %490 = vmatprep.subr.bf16.mxu0 %v878_v32  ;;  %531 = vmatprep.subr.bf16.mxu1 %v880_v33  ;;  %v573_v32 = vrot.slane %v560_v22, %v144_v16 }
  0x59   :  { %491 = vmatpush1.bf16.msra.mxu0 %v882_v34  ;;  %532 = vmatpush1.bf16.msra.mxu1 %v883_v35  ;;  %v569_v34 = vrot.slane %v560_v22, %v140_v18 }
  0x5a   :  { %492 = vmatprep.subr.bf16.mxu0 %v884_v36  ;;  %533 = vmatprep.subr.bf16.mxu1 %v886_v37 }
  0x5d   :  { %493 = vmatpush1.bf16.msra.mxu0 %v888_v38  ;;  %534 = vmatpush1.bf16.msra.mxu1 %v889_v39 }
  0x5e   :  { %494 = vmatprep.subr.bf16.mxu0 %v890_v40  ;;  %535 = vmatprep.subr.bf16.mxu1 %v892_v41 }
  0x61   :  { %495 = vmatpush1.bf16.msra.mxu0 %v894_v42  ;;  %536 = vmatpush1.bf16.msra.mxu1 %v895_v43 }
  0x62   :  { %496 = vmatprep.subr.bf16.mxu0 %v896_v44  ;;  %537 = vmatprep.subr.bf16.mxu1 %v898_v45 }
  0x65   :  { %497 = vmatpush1.bf16.msra.mxu0 %v900_v46  ;;  %538 = vmatpush1.bf16.msra.mxu1 %v901_v48 }
  0x66   :  { %498 = vmatprep.subr.bf16.mxu0 %v902_v50  ;;  %539 = vmatprep.subr.bf16.mxu1 %v904_v51 }
  0x69   :  { %499 = vmatpush1.bf16.msra.mxu0 %v906_v52  ;;  %540 = vmatpush1.bf16.msra.mxu1 %v907_v53  ;;  %v782_v53 = vld [vmem:[%s1135_s5] ss:$0 sm:$0xff] }
  0x6a   :  { %500 = vmatprep.subr.bf16.mxu0 %v908_v54  ;;  %541 = vmatprep.subr.bf16.mxu1 %v910_v55 }
  0x6d   :  { %501 = vmatpush1.bf16.msra.mxu0 %v912_v56  ;;  %542 = vmatpush1.bf16.msra.mxu1 %v913_v57 }
  0x6e   :  { %502 = vmatprep.subr.bf16.mxu0 %v914_v58  ;;  %543 = vmatprep.subr.bf16.mxu1 %v916_v59 }
  0x71   :  { %503 = vmatpush1.bf16.msra.mxu0 %v918_v60  ;;  %544 = vmatpush1.bf16.msra.mxu1 %v919_v61 }
  0x72   :  { %504 = vmatprep.subr.bf16.mxu0 %v920_v62  ;;  %545 = vmatprep.subr.bf16.mxu1 %v922_v63 }
  0x75   :  { %505 = vmatpush1.bf16.msra.mxu0 %v924_v0  ;;  %546 = vmatpush1.bf16.msra.mxu1 %v925_v1 }
  0x76   :  { %800 = vmatprep.subr.bf16.mxu0 %v1035_v5 }
  0x78   :  { %507 = vmatmul.mubr.bf16.vlgmr.msra.gmra.mrb[0].mxu0 %v66_v3  ;;  %548 = vmatmul.mubr.bf16.vlgmr.msra.gmra.mrb[0].mxu1 %v66_v3 }
  0x79   :  { %801 = vmatpush3.bf16.msra.mxu0 %v926_v4  ;;  %816 = vmatprep.mubr.msk.bf16.mxu0 %vm1036_vm0, %v1035_v5 }
  0x7a   :  { %802 = vmatprep.subr.bf16.mxu0 %v1035_v5 }
  0x7d   :  { %803 = vmatpush3.bf16.msra.mxu0 %v927_v6 }
  0x7e   :  { %804 = vmatprep.subr.bf16.mxu0 %v1035_v5 }
  0x81   :  { %805 = vmatpush3.bf16.msra.mxu0 %v928_v7 }
  0x82   :  { %806 = vmatprep.subr.bf16.mxu0 %v1035_v5 }
  0x85   :  { %807 = vmatpush3.bf16.msra.mxu0 %v929_v8 }
  0x86   :  { %808 = vmatprep.subr.bf16.mxu0 %v1035_v5 }
  0x89   :  { %809 = vmatpush3.bf16.msra.mxu0 %v930_v9 }
  0x8a   :  { %810 = vmatprep.subr.bf16.mxu0 %v1035_v5 }
  0x8d   :  { %811 = vmatpush3.bf16.msra.mxu0 %v931_v10 }
  0x8e   :  { %812 = vmatprep.subr.bf16.mxu0 %v1035_v5 }
  0x91   :  { %813 = vmatpush3.bf16.msra.mxu0 %v932_v11 }
  0x92   :  { %814 = vmatprep.subr.bf16.mxu0 %v1035_v5 }
  0x95   :  { %815 = vmatpush3.bf16.msra.mxu0 %v933_v12 }
 0x14b   :  { %v508_v25 = vpop.f32.mrb[0].mxu0  ;;  %v549_v26 = vpop.f32.mrb[0].mxu1 }
 0x14c   :  { %v509_v27 = vadd.f32 %v508_v25, %v137_v20  ;;  %v550_v29 = vadd.f32 %v549_v26, %v145_v21  ;;  %v510_v30 = vpop.f32.mrb[1].mxu0  ;;  %v551_v31 = vpop.f32.mrb[1].mxu1 }
 0x14d   :  { %v511_v33 = vadd.f32 %v510_v30, %v141_v23  ;;  %v552_v35 = vadd.f32 %v551_v31, %v149_v24  ;;  %v512_v36 = vpop.f32.mrb[2].mxu0  ;;  %v553_v37 = vpop.f32.mrb[2].mxu1 }
 0x14e   :  { %v556_v38 = vmax.f32 %v509_v27, 0.0  ;;  %v558_v39 = vmax.f32 %v550_v29, 0.0  ;;  %v513_v40 = vpop.f32.mrb[3].mxu0  ;;  %v554_v41 = vpop.f32.mrb[3].mxu1 }
 0x14f   :  { %v557_v42 = vmax.f32 %v511_v33, 0.0  ;;  %v559_v46 = vmax.f32 %v552_v35, 0.0 }
 0x150   :  { %v582_v43 = vadd.f32 %v565_v28, %v556_v38  ;;  %v584_v44 = vadd.f32 %v573_v32, %v558_v39 }
 0x151   :  { %v583_v45 = vadd.f32 %v569_v34, %v557_v42  ;;  %v585_v49 = vadd.f32 %v577_v47, %v559_v46 }
 0x153   :  { %v586_v48 = vmax.f32 %v582_v43, %v583_v45 }
 0x155   :  { %v587_v50 = vmax.f32 %v586_v48, %v584_v44 }
 0x157   :  { %v588_v51 = vmax.f32 %v587_v50, %v585_v49 }
 0x159   :  { %v589_v52 = vpack.c.bf16 %v588_v51, %v588_v51 }
 0x15b   :  { %817 = vmatmul.mubr.bf16.vlgmr.msra.gmra.mrb[4].mxu0 %v589_v52 }
 0x22e   :  { %v695_v54 = vpop.f32.mrb[4].mxu0 }
 0x22f   :  { %v696_v55 = vadd.f32 %v782_v53, %v695_v54  ;;  %v818_v56 = vpop.f32.mrb[5].mxu0 }
 0x230   :  { %v698_v57 = vpop.f32.mrb[6].mxu0 }
 0x231   :  { %701 = vst [vmem:[#allocation8] sm:$0xff] %v696_v55  ;;  %v819_v58 = vpop.f32.mrb[7].mxu0 }
 0x232   :  { %1011 = shalt.err (!%p1008_p0)
}
 0x233   :  { %s1012_s5 = scalar_lea.hbm %s1136_s6, 128 }
 0x234   :  { %p1013_p1 = scmp.ne.s32.totalorder %s1136_s6, %s1012_s5  ;;  %p1016_p2 = scmp.lt.u32.totalorder %s1012_s5, %s1136_s6 }
 0x236   :  { %p1018_p3 = pnand %p1016_p2, %p1013_p1 }
 0x238   :  { %1021 = shalt.err (!%p1018_p3)
}
 0x239   :  { %711 = dma.vmem_to_hbm [thread:$0]  %s709_s15, 128, %s1136_s6, [#allocation4]  }
 0x23a   :  { %1026 = dma.done.wait [#allocation4], 128  }
 0x23b   :  { %1027 = vsyncadd [#allocation4], 4294967168 }
 0x23c   :  { %715 = vsyncpa [#allocation3], 1 }
 0x23d   :  { %716 = vsyncpa [#allocation6], 1 }
 0x23e   :  { %717 = vsyncpa [#allocation4], 1 }

</bundles_post_ra>
